<compile_context>
chip_gen: v7x
topology: tpu7x:2x2x1
jax: 0.10.0
libtpu: 0.0.40
codegen_flags: <defaults>
</compile_context>

<pallas_src>
import functools

import jax
import jax.numpy as jnp
from jax.experimental import pallas as pl
from jax.experimental.pallas import tpu as pltpu


def _round_up(x: int, m: int) -> int:
    return (x + m - 1) // m * m


def _cdiv(a: int, b: int) -> int:
    return (a + b - 1) // b


@functools.lru_cache(maxsize=1)
def _vmem_limit_bytes() -> int:
    """Generation-aware scoped-VMEM limit with headroom for compiler scratch."""
    try:
        info = pltpu.get_tpu_info()
        cap = int(getattr(info, "vmem_capacity_bytes", 64 * 1024 * 1024))
    except Exception:
        cap = 64 * 1024 * 1024  # conservative v7x-sized fallback
    # ~75% of physical: ~96 MiB on v5e/v6e (128 MiB), ~48 MiB on v7x (64 MiB).
    return max(32 * 1024 * 1024, min((cap * 3) // 4, 110 * 1024 * 1024))


def _mlp_kernel(x_ref, w1_ref, b1_ref, w2_ref, b2_ref, o_ref):
    # x_ref : (tm, Din_p) native dtype   w1_ref: (Din_p, H_p) bf16
    # b1_ref: (1, H_p)    f32            w2_ref: (H_p, Dout_p) bf16
    # b2_ref: (1, Dout_p) f32 (padded cols = -1e30)
    # o_ref : (tm, Dout_p) out dtype
    x = x_ref[...].astype(jnp.bfloat16)   # in-kernel cast (hidden under pipeline)
    b1 = b1_ref[...]                      # hoisted bias reads, broadcast once
    b2 = b2_ref[...]

    # Linear 1 + ReLU: bf16 MXU matmul, f32 accumulate, f32 bias add.
    h = jnp.dot(x, w1_ref[...], preferred_element_type=jnp.float32) + b1
    h = jnp.maximum(h, 0.0)

    # Linear 2: bf16 MXU operands, f32 accumulate.
    logits = jnp.dot(h.astype(jnp.bfloat16), w2_ref[...],
                     preferred_element_type=jnp.float32) + b2

    # Numerically stable log_softmax in f32.  Padded columns carry -1e30 from
    # the padded bias, so they contribute exp() == 0 to the normalizer.
    m = jnp.max(logits, axis=-1, keepdims=True)
    shifted = logits - m
    lse = jnp.log(jnp.sum(jnp.exp(shifted), axis=-1, keepdims=True))
    o_ref[...] = (shifted - lse).astype(o_ref.dtype)


def prepare_mlp_params(w1, b1, w2, b2):
    """One-time pad + bf16 cast of weights (hoisted out of the forward path)."""
    din, hidden = w1.shape
    dout = w2.shape[1]

    din_p = _round_up(din, 128)
    # Contraction dim of the 2nd matmul: prefer a 256-multiple for v6e/v7x
    # 256x256 MXUs, but don't inflate tiny hidden dims.
    h_p = _round_up(hidden, 256) if hidden > 128 else _round_up(hidden, 128)
    dout_p = _round_up(dout, 128)

    w1_p = jnp.pad(w1.astype(jnp.bfloat16), ((0, din_p - din), (0, h_p - hidden)))
    w2_p = jnp.pad(w2.astype(jnp.bfloat16), ((0, h_p - hidden), (0, dout_p - dout)))
    b1_p = jnp.pad(b1.astype(jnp.float32), (0, h_p - hidden)).reshape(1, h_p)
    # Padded output columns get -1e30 so they vanish from the softmax sum.
    b2_p = jnp.pad(b2.astype(jnp.float32), (0, dout_p - dout),
                   constant_values=-1e30).reshape(1, dout_p)

    dims = dict(din=din, hidden=hidden, dout=dout,
                din_p=din_p, h_p=h_p, dout_p=dout_p)
    return (w1_p, b1_p, w2_p, b2_p), dims


@functools.partial(jax.jit,
                   static_argnames=("dout", "max_block_rows", "out_dtype"))
def mlp_forward_padded(x, w1_p, b1_p, w2_p, b2_p, *, dout,
                       max_block_rows=512, out_dtype=None):
    """Forward pass given pre-padded / pre-cast weights from prepare_mlp_params."""
    n, din = x.shape
    din_p, h_p = w1_p.shape
    dout_p = w2_p.shape[1]
    out_dtype = x.dtype if out_dtype is None else out_dtype

    vmem_limit = _vmem_limit_bytes()
    x_itemsize = jnp.dtype(x.dtype).itemsize
    out_itemsize = jnp.dtype(out_dtype).itemsize

    # --- VMEM accounting to right-size the row tile -------------------------
    # Weights are single-buffered (pl.Buffered(1)): counted once.
    weight_bytes = (din_p * h_p + h_p * dout_p) * 2 + (h_p + dout_p) * 4
    # Per-row cost: double-buffered x tile + double-buffered out tile +
    # compiler-managed f32 intermediates (h and logits).
    per_row_bytes = (2 * din_p * x_itemsize
                     + 2 * dout_p * out_itemsize
                     + (h_p + dout_p) * 4)
    budget = vmem_limit - weight_bytes - (4 << 20)  # headroom for compiler scratch
    if budget > per_row_bytes * 16:
        rows_cap = max(16, (budget // per_row_bytes) // 16 * 16)
    else:
        rows_cap = 16
    # TODO(synk): when budget <= 0 (very large Din/H, esp. on v7x's 64 MiB VMEM),
    # add a trailing "arbitrary" K-tiling grid axis over din_p/h_p with a VMEM
    # f32 accumulator + pl.when init/finalize instead of fully-resident weights.

    block_cap = min(max_block_rows, rows_cap)
    n_min = _round_up(n, 16)  # sublane-safe for f32/bf16 inputs
    if n_min <= block_cap:
        if n_min >= 512:
            # Enough work to split: keep >= 2 grid steps so the "parallel" row
            # axis can shard across v7x's two TensorCores.
            block_rows = _round_up(_cdiv(n_min, 2), 16)
            n_pad = 2 * block_rows
        else:
            block_rows = n_min
            n_pad = n_min
    else:
        block_rows = block_cap
        n_pad = _round_up(n, block_rows)

    # Pad x only when shapes require it; no wrapper-side dtype cast (the cast
    # to bf16 happens inside the kernel, hidden behind the pipeline).
    if (n_pad, din_p) != (n, din):
        x_in = jnp.pad(x, ((0, n_pad - n), (0, din_p - din)))
    else:
        x_in = x

    flops = 2 * n_pad * (din_p * h_p + h_p * dout_p)
    bytes_accessed = (n_pad * din_p * x_itemsize
                      + weight_bytes
                      + n_pad * dout_p * out_itemsize)
    cost = pl.CostEstimate(flops=flops,
                           transcendentals=n_pad * dout_p,
                           bytes_accessed=bytes_accessed)

    grid = (n_pad // block_rows,)

    out_padded = pl.pallas_call(
        _mlp_kernel,
        out_shape=jax.ShapeDtypeStruct((n_pad, dout_p), out_dtype),
        grid_spec=pltpu.PrefetchScalarGridSpec(
            num_scalar_prefetch=0,
            grid=grid,
            in_specs=[
                # x tile: streamed (double-buffered by default).
                pl.BlockSpec((block_rows, din_p), lambda i: (i, 0)),
                # Grid-invariant operands: single-buffered (constant index_map).
                pl.BlockSpec((din_p, h_p), lambda i: (0, 0),
                             pipeline_mode=pl.Buffered(1)),
                pl.BlockSpec((1, h_p), lambda i: (0, 0),
                             pipeline_mode=pl.Buffered(1)),
                pl.BlockSpec((h_p, dout_p), lambda i: (0, 0),
                             pipeline_mode=pl.Buffered(1)),
                pl.BlockSpec((1, dout_p), lambda i: (0, 0),
                             pipeline_mode=pl.Buffered(1)),
            ],
            out_specs=pl.BlockSpec((block_rows, dout_p), lambda i: (i, 0)),
        ),
        compiler_params=pltpu.CompilerParams(
            dimension_semantics=("parallel",),
            vmem_limit_bytes=vmem_limit,
        ),
        cost_estimate=cost,
    )(x_in, w1_p, b1_p, w2_p, b2_p)

    return out_padded[:n, :dout]


def mlp_forward(x, w1, b1, w2, b2, edge_index=None, **kwargs):
    """Convenience one-shot path (pads weights per call; prefer prepare_mlp_params)."""
    del edge_index  # unused, interface parity with the PyTorch module
    padded, dims = prepare_mlp_params(w1, b1, w2, b2)
    return mlp_forward_padded(x, *padded, dout=dims["dout"], **kwargs)


def _mlp_reference(x, w1, b1, w2, b2):
    h = jnp.maximum(x @ w1 + b1, 0.0)
    logits = h @ w2 + b2
    return jax.nn.log_softmax(logits, axis=-1)


def init_params(key, in_channels, hidden_channels, out_channels):
    # Deterministic init mimicking PyTorch Linear default: U(-1/sqrt(fan_in), +)
    k1, k2, k3, k4 = jax.random.split(key, 4)
    lim1 = 1.0 / (in_channels ** 0.5)
    lim2 = 1.0 / (hidden_channels ** 0.5)
    w1 = jax.random.uniform(k1, (in_channels, hidden_channels), jnp.float32,
                            -lim1, lim1)
    b1 = jax.random.uniform(k2, (hidden_channels,), jnp.float32, -lim1, lim1)
    w2 = jax.random.uniform(k3, (hidden_channels, out_channels), jnp.float32,
                            -lim2, lim2)
    b2 = jax.random.uniform(k4, (out_channels,), jnp.float32, -lim2, lim2)
    return w1, b1, w2, b2


if __name__ == "__main__":
    key = jax.random.PRNGKey(0)
    in_channels, hidden_channels, out_channels = 16, 32, 8
    n_nodes = 16  # "batch" of nodes

    kx, kp = jax.random.split(key)
    x = jax.random.normal(kx, (n_nodes, in_channels), jnp.float32)
    # edge_index is unused by the forward pass (kept for interface parity)
    edge_index = jnp.zeros((2, 4), jnp.int32)

    w1, b1, w2, b2 = init_params(kp, in_channels, hidden_channels, out_channels)

    # Hoisted one-time weight padding/cast, then the fast forward path.
    padded_params, dims = prepare_mlp_params(w1, b1, w2, b2)
    out = mlp_forward_padded(x, *padded_params, dout=dims["dout"])
    jax.block_until_ready(out)

    assert out.shape == (n_nodes, out_channels)

    # sanity 1: log_softmax rows must exp-sum to 1
    row_sums = jnp.exp(out.astype(jnp.float32)).sum(axis=-1)
    assert bool(jnp.allclose(row_sums, 1.0, atol=1e-3)), row_sums

    # sanity 2: match the pure-JAX f32 reference (bf16 MXU operands -> loose tol)
    ref = _mlp_reference(x, w1, b1, w2, b2)
    assert bool(jnp.allclose(out, ref, atol=5e-2, rtol=5e-2)), (
        float(jnp.max(jnp.abs(out - ref))))

    # also exercise the one-shot convenience wrapper (matches the module API)
    out2 = mlp_forward(x, w1, b1, w2, b2, edge_index)
    jax.block_until_ready(out2)
    assert bool(jnp.allclose(out2, out, atol=1e-6, rtol=1e-6))

    print("KERNEL_OK")
</pallas_src>

<mosaic_0001>
module attributes {stable_mosaic.version = 11 : i64} {
  func.func @_mlp_kernel(%arg0: i32, %arg1: memref<16x128xf32, #tpu.memory_space<vmem>>, %arg2: memref<128x128xbf16, #tpu.memory_space<vmem>>, %arg3: memref<1x128xf32, #tpu.memory_space<vmem>>, %arg4: memref<128x128xbf16, #tpu.memory_space<vmem>>, %arg5: memref<1x128xf32, #tpu.memory_space<vmem>>, %arg6: memref<16x128xf32, #tpu.memory_space<vmem>>) attributes {dimension_semantics = [#tpu.dimension_semantics<parallel>], iteration_bounds = array<i64: 1>, scalar_prefetch = 0 : i64, scratch_operands = 0 : i64, tpu.core_type = #tpu.core_type<tc>, window_params = [{transform_indices = @transform_0, window_bounds = array<i64: 16, 128>}, {pipeline_mode = #tpu.pipeline_mode<synchronous>, transform_indices = @transform_1, window_bounds = array<i64: 128, 128>}, {pipeline_mode = #tpu.pipeline_mode<synchronous>, transform_indices = @transform_2, window_bounds = array<i64: 1, 128>}, {pipeline_mode = #tpu.pipeline_mode<synchronous>, transform_indices = @transform_3, window_bounds = array<i64: 128, 128>}, {pipeline_mode = #tpu.pipeline_mode<synchronous>, transform_indices = @transform_4, window_bounds = array<i64: 1, 128>}, {transform_indices = @transform_5, window_bounds = array<i64: 16, 128>}]} {
    %c0 = arith.constant 0 : index
    %c0_0 = arith.constant 0 : index
    %0 = vector.load %arg1[%c0, %c0_0] : memref<16x128xf32, #tpu.memory_space<vmem>>, vector<16x128xf32>
    %1 = arith.truncf %0 : vector<16x128xf32> to vector<16x128xbf16>
    %c0_1 = arith.constant 0 : index
    %c0_2 = arith.constant 0 : index
    %2 = vector.load %arg3[%c0_1, %c0_2] : memref<1x128xf32, #tpu.memory_space<vmem>>, vector<1x128xf32>
    %c0_3 = arith.constant 0 : index
    %c0_4 = arith.constant 0 : index
    %3 = vector.load %arg5[%c0_3, %c0_4] : memref<1x128xf32, #tpu.memory_space<vmem>>, vector<1x128xf32>
    %c0_5 = arith.constant 0 : index
    %c0_6 = arith.constant 0 : index
    %4 = vector.load %arg2[%c0_5, %c0_6] : memref<128x128xbf16, #tpu.memory_space<vmem>>, vector<128x128xbf16>
    %cst = arith.constant dense<0.000000e+00> : vector<16x128xf32>
    %5 = tpu.matmul %1, %4, %cst {dimension_numbers = #tpu.dot_dimension_numbers<[1], [0], [0], [1], [0, 0, 1, 1], [], []>} : vector<16x128xbf16>, vector<128x128xbf16>, vector<16x128xf32> -> vector<16x128xf32>
    %6 = vector.broadcast %2 : vector<1x128xf32> to vector<16x128xf32>
    %7 = arith.addf %5, %6 : vector<16x128xf32>
    %cst_7 = arith.constant 0.000000e+00 : f32
    %8 = vector.broadcast %cst_7 : f32 to vector<16x128xf32>
    %9 = arith.maximumf %7, %8 : vector<16x128xf32>
    %10 = arith.truncf %9 : vector<16x128xf32> to vector<16x128xbf16>
    %c0_8 = arith.constant 0 : index
    %c0_9 = arith.constant 0 : index
    %11 = vector.load %arg4[%c0_8, %c0_9] : memref<128x128xbf16, #tpu.memory_space<vmem>>, vector<128x128xbf16>
    %cst_10 = arith.constant dense<0.000000e+00> : vector<16x128xf32>
    %12 = tpu.matmul %10, %11, %cst_10 {dimension_numbers = #tpu.dot_dimension_numbers<[1], [0], [0], [1], [0, 0, 1, 1], [], []>} : vector<16x128xbf16>, vector<128x128xbf16>, vector<16x128xf32> -> vector<16x128xf32>
    %13 = vector.broadcast %3 : vector<1x128xf32> to vector<16x128xf32>
    %14 = arith.addf %12, %13 : vector<16x128xf32>
    %cst_11 = arith.constant dense<0xFF800000> : vector<16xf32>
    %15 = vector.multi_reduction <maximumf>, %14, %cst_11 [1] : vector<16x128xf32> to vector<16xf32>
    %16 = vector.shape_cast %15 : vector<16xf32> to vector<16x1xf32>
    %17 = vector.broadcast %16 : vector<16x1xf32> to vector<16x128xf32>
    %18 = arith.subf %14, %17 : vector<16x128xf32>
    %19 = math.exp %18 : vector<16x128xf32>
    %cst_12 = arith.constant dense<0.000000e+00> : vector<16xf32>
    %20 = vector.multi_reduction <add>, %19, %cst_12 [1] : vector<16x128xf32> to vector<16xf32>
    %21 = vector.shape_cast %20 : vector<16xf32> to vector<16x1xf32>
    %22 = math.log %21 : vector<16x1xf32>
    %23 = vector.broadcast %22 : vector<16x1xf32> to vector<16x128xf32>
    %24 = arith.subf %18, %23 : vector<16x128xf32>
    %c0_13 = arith.constant 0 : index
    %c0_14 = arith.constant 0 : index
    %25 = vector.load %arg6[%c0_13, %c0_14] : memref<16x128xf32, #tpu.memory_space<vmem>>, vector<16x128xf32>
    tpu.vector_store %arg6[%c0_13, %c0_14], %24 {strides = array<i32>} : memref<16x128xf32, #tpu.memory_space<vmem>>, vector<16x128xf32>,
    return
  }
  func.func @transform_0(%arg0: i32) -> (i32, i32) {
    %c0_i32 = arith.constant 0 : i32
    %c0_i32_0 = arith.constant 0 : i32
    return %arg0, %c0_i32 : i32, i32
  }
  func.func @transform_1(%arg0: i32) -> (i32, i32) {
    %c0_i32 = arith.constant 0 : i32
    %c0_i32_0 = arith.constant 0 : i32
    %c0_i32_1 = arith.constant 0 : i32
    return %c0_i32, %c0_i32_0 : i32, i32
  }
  func.func @transform_2(%arg0: i32) -> (i32, i32) {
    %c0_i32 = arith.constant 0 : i32
    %c0_i32_0 = arith.constant 0 : i32
    %c0_i32_1 = arith.constant 0 : i32
    return %c0_i32, %c0_i32_0 : i32, i32
  }
  func.func @transform_3(%arg0: i32) -> (i32, i32) {
    %c0_i32 = arith.constant 0 : i32
    %c0_i32_0 = arith.constant 0 : i32
    %c0_i32_1 = arith.constant 0 : i32
    return %c0_i32, %c0_i32_0 : i32, i32
  }
  func.func @transform_4(%arg0: i32) -> (i32, i32) {
    %c0_i32 = arith.constant 0 : i32
    %c0_i32_0 = arith.constant 0 : i32
    %c0_i32_1 = arith.constant 0 : i32
    return %c0_i32, %c0_i32_0 : i32, i32
  }
  func.func @transform_5(%arg0: i32) -> (i32, i32) {
    %c0_i32 = arith.constant 0 : i32
    %c0_i32_0 = arith.constant 0 : i32
    return %arg0, %c0_i32 : i32, i32
  }
}

</mosaic_0001>

<bundles_post_ra>
// kernel: mlp_forward_padded.1
= control target key start
LH: loop header
LB: loop body
LE: loop exit
PB: predicated region body
PF: predicated region fallthrough
CT: control target
= control target key end

     0   :  { %10 = vsyncpa [#allocation3], 0  ;;  %s539_s0 = inlined_call_operand.vmem [shape: f32[16,128], index: 0, kind: input, shape index: {}]   ;;  %s540_s1 = inlined_call_operand.hbm [shape: bf16[128,128], index: 1, kind: input, shape index: {}]   ;;  %s541_s2 = inlined_call_operand.vmem [shape: f32[1,128], index: 2, kind: input, shape index: {}]   ;;  %s542_s3 = inlined_call_operand.hbm [shape: bf16[128,128], index: 3, kind: input, shape index: {}]   ;;  %s543_s4 = inlined_call_operand.vmem [shape: f32[1,128], index: 4, kind: input, shape index: {}]   ;;  %s544_s5 = inlined_call_operand.vmem [shape: f32[16,128], index: 5, kind: output, shape index: {}]  }
   0x1   :  { %11 = vsyncpa [#allocation5], 0  ;;  %s461_s18 = smov [#allocation2]   ;;  %s413_s22 = scalar_lea.hbm %s540_s1, 1024 }
   0x2   :  { %s19_s19 = sshll.u32 %s461_s18, 4  ;;  %p414_p0 = scmp.ne.s32.totalorder %s540_s1, %s413_s22  ;;  %s20_s19 = int_to_ptr.vmem [resolvable:$true] %s19_s19 }
   0x3   :  { %p417_p1 = scmp.lt.u32.totalorder %s413_s22, %s540_s1 }
   0x5   :  { %p419_p2 = pnand %p417_p1, %p414_p0 }
   0x7   :  { %422 = shalt.err (!%p419_p2)
}
   0x8   :  { %s423_s27 = scalar_lea.vmem %s20_s19, 1024  ;;  %p428_p4 = scmp.lt.s32.totalorder %s20_s19, %s20_s19 }
   0x9   :  { %p424_p3 = scmp.ne.s32.totalorder %s20_s19, %s423_s27  ;;  %p429_p5 = scmp.lt.s32.totalorder %s423_s27, %s423_s27 }
   0xb   :  { %p430_p6 = por %p429_p5, %p428_p4 }
   0xd   :  { %p431_p7 = pnand %p430_p6, %p424_p3 }
   0xf   :  { %434 = shalt.err (!%p431_p7)
}
  0x10   :  { %s462_s28 = smov 64   ;;  %s463_s29 = smov 4  }
  0x11   :  { %25 = dma.hbm_to_vmem [thread:$0]  %s540_s1, 1024, %s20_s19, [#allocation3], %s462_s28, %s462_s28, %s463_s29  }
  0x12   :  { %s464_s7 = smov [#allocation4]   ;;  %s435_s11 = scalar_lea.hbm %s542_s3, 1024 }
  0x13   :  { %s33_s8 = sshll.u32 %s464_s7, 4  ;;  %p436_p8 = scmp.ne.s32.totalorder %s542_s3, %s435_s11  ;;  %s34_s8 = int_to_ptr.vmem [resolvable:$true] %s33_s8 }
  0x14   :  { %p439_p9 = scmp.lt.u32.totalorder %s435_s11, %s542_s3 }
  0x16   :  { %p441_p10 = pnand %p439_p9, %p436_p8 }
  0x18   :  { %444 = shalt.err (!%p441_p10)
}
  0x19   :  { %s445_s16 = scalar_lea.vmem %s34_s8, 1024  ;;  %p450_p12 = scmp.lt.s32.totalorder %s34_s8, %s34_s8 }
  0x1a   :  { %p446_p11 = scmp.ne.s32.totalorder %s34_s8, %s445_s16  ;;  %p451_p13 = scmp.lt.s32.totalorder %s445_s16, %s445_s16 }
  0x1c   :  { %p452_p0 = por %p451_p13, %p450_p12 }
  0x1e   :  { %p453_p1 = pnand %p452_p0, %p446_p11 }
  0x20   :  { %456 = shalt.err (!%p453_p1)
}
  0x21   :  { %39 = dma.hbm_to_vmem [thread:$0]  %s542_s3, 1024, %s34_s8, [#allocation5], %s462_s28, %s462_s28, %s463_s29  }
  0x22   :  { %457 = dma.done.wait [#allocation3], 1024  }
  0x23   :  { %458 = vsyncadd [#allocation3], 4294966272 }
  0x24   :  { %459 = dma.done.wait [#allocation5], 1024  }
  0x25   :  { %460 = vsyncadd [#allocation5], 4294966272  ;;  %v465_v0 = vmov 0.0   ;;  %vm466_vm0 = vmmov 0   ;;  %v389_v1 = vld [vmem:[#allocation2] sm:$0xff]   ;;  %v390_v2 = vld [vmem:[#allocation2 + $0x8] sm:$0xff]  }
  0x26   :  { %343 = vmatprep.subr.bf16.mxu0 %v465_v0  ;;  %359 = vmatprep.mubr.msk.bf16.mxu0 %vm466_vm0, %v465_v0  ;;  %v391_v3 = vld [vmem:[#allocation2 + $0x10] sm:$0xff]   ;;  %v397_v4 = vld [vmem:[#allocation4] sm:$0xff]   ;;  %v392_v5 = vld [vmem:[#allocation2 + $0x18] sm:$0xff]  }
  0x27   :  { %363 = vmatprep.subr.bf16.mxu1 %v465_v0  ;;  %379 = vmatprep.mubr.msk.bf16.mxu1 %vm466_vm0, %v465_v0  ;;  %v398_v6 = vld [vmem:[#allocation4 + $0x8] sm:$0xff]   ;;  %v393_v7 = vld [vmem:[#allocation2 + $0x20] sm:$0xff]   ;;  %v399_v8 = vld [vmem:[#allocation4 + $0x10] sm:$0xff]  }
  0x28   :  { %344 = vmatpush3.bf16.msra.mxu0 %v389_v1  ;;  %364 = vmatpush3.bf16.msra.mxu1 %v397_v4  ;;  %v394_v9 = vld [vmem:[#allocation2 + $0x28] sm:$0xff]   ;;  %v400_v10 = vld [vmem:[#allocation4 + $0x18] sm:$0xff]   ;;  %v395_v11 = vld [vmem:[#allocation2 + $0x30] sm:$0xff]  }
  0x29   :  { %345 = vmatprep.subr.bf16.mxu0 %v465_v0  ;;  %365 = vmatprep.subr.bf16.mxu1 %v465_v0  ;;  %v401_v12 = vld [vmem:[#allocation4 + $0x20] sm:$0xff]   ;;  %v396_v13 = vld [vmem:[#allocation2 + $0x38] sm:$0xff]   ;;  %v50_v15 = vld [vmem:[%s539_s0 + $0x8] sm:$0xff] }
  0x2a   :  { %v49_v14 = vld [vmem:[%s539_s0] sm:$0xff]  ;;  %v402_v16 = vld [vmem:[#allocation4 + $0x28] sm:$0xff]   ;;  %v403_v18 = vld [vmem:[#allocation4 + $0x30] sm:$0xff]  }
  0x2b   :  { %v51_v17 = vpack.c.bf16 %v50_v15, %v49_v14  ;;  %v404_v19 = vld [vmem:[#allocation4 + $0x38] sm:$0xff]   ;;  %v307_v20 = vld [vmem:[%s541_s2] ss:$0 sm:$0xff] }
  0x2c   :  { %346 = vmatpush3.bf16.msra.mxu0 %v390_v2  ;;  %366 = vmatpush3.bf16.msra.mxu1 %v398_v6  ;;  %v316_v30 = vld [vmem:[%s543_s4] ss:$0 sm:$0xff] }
  0x2d   :  { %347 = vmatprep.subr.bf16.mxu0 %v465_v0  ;;  %367 = vmatprep.subr.bf16.mxu1 %v465_v0 }
  0x30   :  { %348 = vmatpush3.bf16.msra.mxu0 %v391_v3  ;;  %368 = vmatpush3.bf16.msra.mxu1 %v399_v8 }
  0x31   :  { %349 = vmatprep.subr.bf16.mxu0 %v465_v0  ;;  %369 = vmatprep.subr.bf16.mxu1 %v465_v0 }
  0x34   :  { %350 = vmatpush3.bf16.msra.mxu0 %v392_v5  ;;  %370 = vmatpush3.bf16.msra.mxu1 %v400_v10 }
  0x35   :  { %351 = vmatprep.subr.bf16.mxu0 %v465_v0  ;;  %371 = vmatprep.subr.bf16.mxu1 %v465_v0 }
  0x38   :  { %352 = vmatpush3.bf16.msra.mxu0 %v393_v7  ;;  %372 = vmatpush3.bf16.msra.mxu1 %v401_v12 }
  0x39   :  { %353 = vmatprep.subr.bf16.mxu0 %v465_v0  ;;  %373 = vmatprep.subr.bf16.mxu1 %v465_v0 }
  0x3c   :  { %354 = vmatpush3.bf16.msra.mxu0 %v394_v9  ;;  %374 = vmatpush3.bf16.msra.mxu1 %v402_v16 }
  0x3d   :  { %355 = vmatprep.subr.bf16.mxu0 %v465_v0  ;;  %375 = vmatprep.subr.bf16.mxu1 %v465_v0 }
  0x40   :  { %356 = vmatpush3.bf16.msra.mxu0 %v395_v11  ;;  %376 = vmatpush3.bf16.msra.mxu1 %v403_v18 }
  0x41   :  { %357 = vmatprep.subr.bf16.mxu0 %v465_v0  ;;  %377 = vmatprep.subr.bf16.mxu1 %v465_v0 }
  0x44   :  { %358 = vmatpush3.bf16.msra.mxu0 %v396_v13  ;;  %378 = vmatpush3.bf16.msra.mxu1 %v404_v19 }
  0x47   :  { %360 = vmatmul.mubr.bf16.vlgmr.msra.gmra.mrb[0].mxu0 %v51_v17 }
 0x11a   :  { %v158_v21 = vpop.f32.mrb[0].mxu0 }
 0x11b   :  { %v159_v22 = vadd.f32 %v307_v20, %v158_v21  ;;  %v361_v23 = vpop.f32.mrb[1].mxu0 }
 0x11c   :  { %v161_v24 = vpop.f32.mrb[2].mxu0 }
 0x11d   :  { %v162_v25 = vadd.f32 %v307_v20, %v161_v24  ;;  %v362_v26 = vpop.f32.mrb[3].mxu0  ;;  %v165_v27 = vmax.f32 %v159_v22, 0.0 }
 0x11f   :  { %v166_v28 = vmax.f32 %v162_v25, 0.0 }
 0x121   :  { %v167_v29 = vpack.c.bf16 %v166_v28, %v165_v27 }
 0x123   :  { %380 = vmatmul.mubr.bf16.vlgmr.msra.gmra.mrb[0].mxu1 %v167_v29 }
 0x1f6   :  { %v272_v31 = vpop.f32.mrb[0].mxu1 }
 0x1f7   :  { %v273_v32 = vadd.f32 %v316_v30, %v272_v31  ;;  %v381_v33 = vpop.f32.mrb[1].mxu1 }
 0x1f8   :  { %v275_v34 = vpop.f32.mrb[2].mxu1 }
 0x1f9   :  { %279 = vmax.xlane.f32.xlu0 %v273_v32  ;;  %v382_v35 = vpop.f32.mrb[3].mxu1  ;;  %v276_v36 = vadd.f32 %v316_v30, %v275_v34 }
 0x1fd   :  { %281 = vmax.xlane.f32.xlu0 %v276_v36 }
 0x286   :  { %v280_v37 = vpop.xlane.xlu0 %279 }
 0x287   :  { %v283_v38 = vsub.f32 %v273_v32, %v280_v37 }
 0x289   :  { %v285_v39 = vmul.f32 1.442695, %v283_v38 }
 0x28a   :  { %v282_v40 = vpop.xlane.xlu0 %281 }
 0x28b   :  { %v284_v41 = vsub.f32 %v276_v36, %v282_v40  ;;  %405 = vpow2.f32 %v285_v39 }
 0x28d   :  { %v287_v42 = vmul.f32 1.442695, %v284_v41 }
 0x28f   :  { %407 = vpow2.f32 %v287_v42 }
 0x295   :  { %v406_v43 = vpop.eup %405 }
 0x296   :  { %289 = vadd.xlane.f32.xlu1 %v406_v43 }
 0x299   :  { %v408_v44 = vpop.eup %407 }
 0x29a   :  { %291 = vadd.xlane.f32.xlu1 %v408_v44 }
 0x323   :  { %v290_v45 = vpop.xlane.xlu1 %289 }
 0x324   :  { %409 = vlog2.f32 %v290_v45 }
 0x327   :  { %v292_v46 = vpop.xlane.xlu1 %291 }
 0x328   :  { %411 = vlog2.f32 %v292_v46 }
 0x32e   :  { %v410_v47 = vpop.eup %409 }
 0x32f   :  { %v294_v48 = vmul.f32 0.6931472, %v410_v47 }
 0x331   :  { %v297_v49 = vsub.f32 %v283_v38, %v294_v48 }
 0x332   :  { %v412_v50 = vpop.eup %411 }
 0x333   :  { %299 = vst [vmem:[%s544_s5] sm:$0xff] %v297_v49  ;;  %v296_v51 = vmul.f32 0.6931472, %v412_v50 }
 0x335   :  { %v298_v52 = vsub.f32 %v284_v41, %v296_v51 }
 0x337   :  { %300 = vst [vmem:[%s544_s5 + $0x8] sm:$0xff] %v298_v52 }
 0x338   :  { %305 = vsyncpa [#allocation3], 1 }
 0x339   :  { %306 = vsyncpa [#allocation5], 1 }

</bundles_post_ra>
